<compile_context>
chip_gen: v7x
topology: tpu7x:2x2x1
jax: 0.10.0
libtpu: 0.0.40
codegen_flags: <defaults>
</compile_context>

<pallas_src>
import functools

import jax
import jax.numpy as jnp
from jax.experimental import pallas as pl
from jax.experimental.pallas import tpu as pltpu


def _cdiv(a, b):
    return (a + b - 1) // b


def _round_up(a, b):
    return _cdiv(a, b) * b


def _fixed_pool_kernel(x_ref, o_ref, *, fs, pw, ph, w, h, cb):
    """Pool a (TB, w, h) tile of images into (TB, fs*fs) window maxima.

    Window (i, j) of the conceptually zero-padded image equals
      max(valid elements)            if it lies fully inside (w, h)
      max(max(valid elements), 0)    if it overlaps the zero padding
      0                              if it is entirely zero padding
    which reproduces F.pad(value=0) + MaxPool2d exactly.
    """
    tb = x_ref.shape[0]
    dtype = x_ref.dtype
    zero = jnp.zeros((), dtype)

    # Static chunking over batch rows keeps each band load at ~32 vregs.
    for c0 in range(0, tb, cb):
        ccb = min(cb, tb - c0)
        for i in range(fs):
            rlo = i * pw
            rhi = min(rlo + pw, w)
            row_has_pad = (rlo + pw) > w          # band touches zero-pad rows
            rowmax = None
            if rlo < w:
                band = x_ref[c0:c0 + ccb, rlo:rhi, :]      # (ccb, rhi-rlo, h)
                rowmax = jnp.max(band, axis=1)             # (ccb, h)
            for j in range(fs):
                clo = j * ph
                chi = min(clo + ph, h)
                col_has_pad = (clo + ph) > h
                idx = i * fs + j
                if rlo >= w or clo >= h:
                    # Window lies entirely in the zero padding.
                    val = jnp.zeros((ccb, 1), dtype)
                else:
                    val = jnp.max(rowmax[:, clo:chi], axis=1, keepdims=True)
                    if row_has_pad or col_has_pad:
                        # Window overlaps zero padding -> clamp at 0 (not -inf).
                        val = jnp.maximum(val, zero)
                o_ref[c0:c0 + ccb, idx:idx + 1] = val


def _choose_tiles(b, w, h, pw, dtype, batch_tile):
    """Pick (batch tile TB, in-kernel chunk CB) for the given problem."""
    itemsize = jnp.dtype(dtype).itemsize
    packing = max(1, 4 // itemsize)        # 1 for f32, 2 for bf16, 4 for int8
    sub = 8 * packing                      # sublane tile height
    lane = 128

    # Layout-padded VMEM footprint of one image inside the input block.
    padded_img_bytes = _round_up(w, sub) * _round_up(h, lane) * itemsize
    # vregs one image contributes to a single row-band load.
    vregs_per_img = _cdiv(min(pw, w), sub) * _cdiv(h, lane)
    cb = max(1, min(64, 32 // max(1, vregs_per_img)))
    if cb >= sub:
        cb = (cb // sub) * sub

    if batch_tile is None:
        # ~2 MiB (padded) per input buffer -> ~4 MiB double buffered; safe on
        # v5e/v6e/v7x default scoped VMEM while being large enough to amortize
        # the per-grid-step overhead and issue big contiguous HBM reads.
        tb = max(1, (2 * 1024 * 1024) // padded_img_bytes)
        tb = min(tb, 16 * cb)              # bound the static chunk unrolling
    else:
        tb = max(1, int(batch_tile))
    tb = min(tb, b)
    if tb < b:
        # Output block is (tb, fs*fs): its second-minor dim must be a multiple
        # of the sublane tile (or equal to the full batch).
        tb = max(sub, (tb // sub) * sub)
        tb = min(tb, b)
    # TODO(synk): very large single images (padded footprint > ~4 MiB each) would
    # need an additional W-tiled grid axis; not required at module-typical sizes.
    return tb, cb


def fixed_pooling(x, fixed_size, *, batch_tile=None):
    """Pallas TPU implementation of FixedPooling.forward: (b,w,h)->(b,fs,fs)."""
    b, w, h = x.shape
    fs = int(fixed_size)
    pw = _cdiv(w, fs)      # pool kernel along W
    ph = _cdiv(h, fs)      # pool kernel along H

    tb, cb = _choose_tiles(b, w, h, pw, x.dtype, batch_tile)
    grid = (_cdiv(b, tb),)

    kernel = functools.partial(
        _fixed_pool_kernel, fs=fs, pw=pw, ph=ph, w=w, h=h, cb=cb)

    out_flat = pl.pallas_call(
        kernel,
        out_shape=jax.ShapeDtypeStruct((b, fs * fs), x.dtype),
        grid=grid,
        in_specs=[pl.BlockSpec((tb, w, h), lambda i: (i, 0, 0))],
        out_specs=pl.BlockSpec((tb, fs * fs), lambda i: (i, 0)),
        compiler_params=pltpu.CompilerParams(
            dimension_semantics=("parallel",)),
    )(x)
    # Free (contiguous) reshape back to the module's (b, fs, fs) output.
    return out_flat.reshape(b, fs, fs)


def _reference(x, fixed_size):
    """Pure-JAX reference mirroring the PyTorch module."""
    b, w, h = x.shape
    pw = _cdiv(w, fixed_size)
    ph = _cdiv(h, fixed_size)
    Wp, Hp = fixed_size * pw, fixed_size * ph
    xp = jnp.pad(x, ((0, 0), (0, Wp - w), (0, Hp - h)))
    x5 = xp.reshape(b, fixed_size, pw, fixed_size, ph)
    return jnp.max(x5, axis=(2, 4))


if __name__ == "__main__":
    # FixedPooling has no learnable parameters; nothing to initialize.
    key = jax.random.PRNGKey(0)
    cases = [
        # (b, w, h, fixed_size, batch_tile)
        (6, 13, 10, 4, None),    # ragged W and H tails, single grid step
        (64, 16, 24, 4, 16),     # evenly divisible, grid of 4 batch tiles
        (10, 4, 7, 3, 8),        # uneven grid + an all-padding row band
        (512, 16, 12, 4, None),  # auto tile selection, multiple grid steps
    ]
    for (b, w, h, fs, bt) in cases:
        key, sk = jax.random.split(key)
        x = jax.random.normal(sk, (b, w, h), dtype=jnp.float32)
        out = jax.block_until_ready(fixed_pooling(x, fs, batch_tile=bt))
        ref = _reference(x, fs)
        assert out.shape == (b, fs, fs), (out.shape, (b, fs, fs))
        assert jnp.allclose(out, ref, atol=1e-6, rtol=1e-6), (
            f"mismatch vs reference for b={b} w={w} h={h} fs={fs} tile={bt}")

    print("KERNEL_OK")
</pallas_src>

<mosaic_0001>
module attributes {stable_mosaic.version = 11 : i64} {
  func.func @_fixed_pool_kernel(%arg0: i32, %arg1: memref<6x13x10xf32, #tpu.memory_space<vmem>>, %arg2: memref<6x16xf32, #tpu.memory_space<vmem>>) attributes {dimension_semantics = [#tpu.dimension_semantics<parallel>], iteration_bounds = array<i64: 1>, scalar_prefetch = 0 : i64, scratch_operands = 0 : i64, tpu.core_type = #tpu.core_type<tc>, window_params = [{transform_indices = @transform_0, window_bounds = array<i64: 6, 13, 10>}, {transform_indices = @transform_1, window_bounds = array<i64: 6, 16>}]} {
    %c0 = arith.constant 0 : index
    %c0_0 = arith.constant 0 : index
    %c0_1 = arith.constant 0 : index
    %0 = vector.load %arg1[%c0, %c0_0, %c0_1] : memref<6x13x10xf32, #tpu.memory_space<vmem>>, vector<6x4x10xf32>
    %cst = arith.constant dense<0xFF800000> : vector<6x10xf32>
    %1 = vector.multi_reduction <maximumf>, %0, %cst [1] : vector<6x4x10xf32> to vector<6x10xf32>
    %2 = vector.extract_strided_slice %1 {offsets = [0, 0], sizes = [6, 3], strides = [1, 1]} : vector<6x10xf32> to vector<6x3xf32>
    %cst_2 = arith.constant dense<0xFF800000> : vector<6xf32>
    %3 = vector.multi_reduction <maximumf>, %2, %cst_2 [1] : vector<6x3xf32> to vector<6xf32>
    %4 = vector.shape_cast %3 : vector<6xf32> to vector<6x1xf32>
    %c0_3 = arith.constant 0 : index
    %c0_4 = arith.constant 0 : index
    %5 = vector.load %arg2[%c0_3, %c0_4] : memref<6x16xf32, #tpu.memory_space<vmem>>, vector<6x1xf32>
    tpu.vector_store %arg2[%c0_3, %c0_4], %4 {strides = array<i32>} : memref<6x16xf32, #tpu.memory_space<vmem>>, vector<6x1xf32>,
    %6 = vector.extract_strided_slice %1 {offsets = [0, 3], sizes = [6, 3], strides = [1, 1]} : vector<6x10xf32> to vector<6x3xf32>
    %cst_5 = arith.constant dense<0xFF800000> : vector<6xf32>
    %7 = vector.multi_reduction <maximumf>, %6, %cst_5 [1] : vector<6x3xf32> to vector<6xf32>
    %8 = vector.shape_cast %7 : vector<6xf32> to vector<6x1xf32>
    %c0_6 = arith.constant 0 : index
    %c1 = arith.constant 1 : index
    %9 = vector.load %arg2[%c0_6, %c1] : memref<6x16xf32, #tpu.memory_space<vmem>>, vector<6x1xf32>
    tpu.vector_store %arg2[%c0_6, %c1], %8 {strides = array<i32>} : memref<6x16xf32, #tpu.memory_space<vmem>>, vector<6x1xf32>,
    %10 = vector.extract_strided_slice %1 {offsets = [0, 6], sizes = [6, 3], strides = [1, 1]} : vector<6x10xf32> to vector<6x3xf32>
    %cst_7 = arith.constant dense<0xFF800000> : vector<6xf32>
    %11 = vector.multi_reduction <maximumf>, %10, %cst_7 [1] : vector<6x3xf32> to vector<6xf32>
    %12 = vector.shape_cast %11 : vector<6xf32> to vector<6x1xf32>
    %c0_8 = arith.constant 0 : index
    %c2 = arith.constant 2 : index
    %13 = vector.load %arg2[%c0_8, %c2] : memref<6x16xf32, #tpu.memory_space<vmem>>, vector<6x1xf32>
    tpu.vector_store %arg2[%c0_8, %c2], %12 {strides = array<i32>} : memref<6x16xf32, #tpu.memory_space<vmem>>, vector<6x1xf32>,
    %14 = vector.extract_strided_slice %1 {offsets = [0, 9], sizes = [6, 1], strides = [1, 1]} : vector<6x10xf32> to vector<6x1xf32>
    %cst_9 = arith.constant dense<0xFF800000> : vector<6xf32>
    %15 = vector.multi_reduction <maximumf>, %14, %cst_9 [1] : vector<6x1xf32> to vector<6xf32>
    %16 = vector.shape_cast %15 : vector<6xf32> to vector<6x1xf32>
    %cst_10 = arith.constant 0.000000e+00 : f32
    %17 = vector.broadcast %cst_10 : f32 to vector<6x1xf32>
    %18 = arith.maximumf %16, %17 : vector<6x1xf32>
    %c0_11 = arith.constant 0 : index
    %c3 = arith.constant 3 : index
    %19 = vector.load %arg2[%c0_11, %c3] : memref<6x16xf32, #tpu.memory_space<vmem>>, vector<6x1xf32>
    tpu.vector_store %arg2[%c0_11, %c3], %18 {strides = array<i32>} : memref<6x16xf32, #tpu.memory_space<vmem>>, vector<6x1xf32>,
    %c0_12 = arith.constant 0 : index
    %c4 = arith.constant 4 : index
    %c0_13 = arith.constant 0 : index
    %20 = vector.load %arg1[%c0_12, %c4, %c0_13] : memref<6x13x10xf32, #tpu.memory_space<vmem>>, vector<6x4x10xf32>
    %cst_14 = arith.constant dense<0xFF800000> : vector<6x10xf32>
    %21 = vector.multi_reduction <maximumf>, %20, %cst_14 [1] : vector<6x4x10xf32> to vector<6x10xf32>
    %22 = vector.extract_strided_slice %21 {offsets = [0, 0], sizes = [6, 3], strides = [1, 1]} : vector<6x10xf32> to vector<6x3xf32>
    %cst_15 = arith.constant dense<0xFF800000> : vector<6xf32>
    %23 = vector.multi_reduction <maximumf>, %22, %cst_15 [1] : vector<6x3xf32> to vector<6xf32>
    %24 = vector.shape_cast %23 : vector<6xf32> to vector<6x1xf32>
    %c0_16 = arith.constant 0 : index
    %c4_17 = arith.constant 4 : index
    %25 = vector.load %arg2[%c0_16, %c4_17] : memref<6x16xf32, #tpu.memory_space<vmem>>, vector<6x1xf32>
    tpu.vector_store %arg2[%c0_16, %c4_17], %24 {strides = array<i32>} : memref<6x16xf32, #tpu.memory_space<vmem>>, vector<6x1xf32>,
    %26 = vector.extract_strided_slice %21 {offsets = [0, 3], sizes = [6, 3], strides = [1, 1]} : vector<6x10xf32> to vector<6x3xf32>
    %cst_18 = arith.constant dense<0xFF800000> : vector<6xf32>
    %27 = vector.multi_reduction <maximumf>, %26, %cst_18 [1] : vector<6x3xf32> to vector<6xf32>
    %28 = vector.shape_cast %27 : vector<6xf32> to vector<6x1xf32>
    %c0_19 = arith.constant 0 : index
    %c5 = arith.constant 5 : index
    %29 = vector.load %arg2[%c0_19, %c5] : memref<6x16xf32, #tpu.memory_space<vmem>>, vector<6x1xf32>
    tpu.vector_store %arg2[%c0_19, %c5], %28 {strides = array<i32>} : memref<6x16xf32, #tpu.memory_space<vmem>>, vector<6x1xf32>,
    %30 = vector.extract_strided_slice %21 {offsets = [0, 6], sizes = [6, 3], strides = [1, 1]} : vector<6x10xf32> to vector<6x3xf32>
    %cst_20 = arith.constant dense<0xFF800000> : vector<6xf32>
    %31 = vector.multi_reduction <maximumf>, %30, %cst_20 [1] : vector<6x3xf32> to vector<6xf32>
    %32 = vector.shape_cast %31 : vector<6xf32> to vector<6x1xf32>
    %c0_21 = arith.constant 0 : index
    %c6 = arith.constant 6 : index
    %33 = vector.load %arg2[%c0_21, %c6] : memref<6x16xf32, #tpu.memory_space<vmem>>, vector<6x1xf32>
    tpu.vector_store %arg2[%c0_21, %c6], %32 {strides = array<i32>} : memref<6x16xf32, #tpu.memory_space<vmem>>, vector<6x1xf32>,
    %34 = vector.extract_strided_slice %21 {offsets = [0, 9], sizes = [6, 1], strides = [1, 1]} : vector<6x10xf32> to vector<6x1xf32>
    %cst_22 = arith.constant dense<0xFF800000> : vector<6xf32>
    %35 = vector.multi_reduction <maximumf>, %34, %cst_22 [1] : vector<6x1xf32> to vector<6xf32>
    %36 = vector.shape_cast %35 : vector<6xf32> to vector<6x1xf32>
    %cst_23 = arith.constant 0.000000e+00 : f32
    %37 = vector.broadcast %cst_23 : f32 to vector<6x1xf32>
    %38 = arith.maximumf %36, %37 : vector<6x1xf32>
    %c0_24 = arith.constant 0 : index
    %c7 = arith.constant 7 : index
    %39 = vector.load %arg2[%c0_24, %c7] : memref<6x16xf32, #tpu.memory_space<vmem>>, vector<6x1xf32>
    tpu.vector_store %arg2[%c0_24, %c7], %38 {strides = array<i32>} : memref<6x16xf32, #tpu.memory_space<vmem>>, vector<6x1xf32>,
    %c0_25 = arith.constant 0 : index
    %c8 = arith.constant 8 : index
    %c0_26 = arith.constant 0 : index
    %40 = vector.load %arg1[%c0_25, %c8, %c0_26] : memref<6x13x10xf32, #tpu.memory_space<vmem>>, vector<6x4x10xf32>
    %cst_27 = arith.constant dense<0xFF800000> : vector<6x10xf32>
    %41 = vector.multi_reduction <maximumf>, %40, %cst_27 [1] : vector<6x4x10xf32> to vector<6x10xf32>
    %42 = vector.extract_strided_slice %41 {offsets = [0, 0], sizes = [6, 3], strides = [1, 1]} : vector<6x10xf32> to vector<6x3xf32>
    %cst_28 = arith.constant dense<0xFF800000> : vector<6xf32>
    %43 = vector.multi_reduction <maximumf>, %42, %cst_28 [1] : vector<6x3xf32> to vector<6xf32>
    %44 = vector.shape_cast %43 : vector<6xf32> to vector<6x1xf32>
    %c0_29 = arith.constant 0 : index
    %c8_30 = arith.constant 8 : index
    %45 = vector.load %arg2[%c0_29, %c8_30] : memref<6x16xf32, #tpu.memory_space<vmem>>, vector<6x1xf32>
    tpu.vector_store %arg2[%c0_29, %c8_30], %44 {strides = array<i32>} : memref<6x16xf32, #tpu.memory_space<vmem>>, vector<6x1xf32>,
    %46 = vector.extract_strided_slice %41 {offsets = [0, 3], sizes = [6, 3], strides = [1, 1]} : vector<6x10xf32> to vector<6x3xf32>
    %cst_31 = arith.constant dense<0xFF800000> : vector<6xf32>
    %47 = vector.multi_reduction <maximumf>, %46, %cst_31 [1] : vector<6x3xf32> to vector<6xf32>
    %48 = vector.shape_cast %47 : vector<6xf32> to vector<6x1xf32>
    %c0_32 = arith.constant 0 : index
    %c9 = arith.constant 9 : index
    %49 = vector.load %arg2[%c0_32, %c9] : memref<6x16xf32, #tpu.memory_space<vmem>>, vector<6x1xf32>
    tpu.vector_store %arg2[%c0_32, %c9], %48 {strides = array<i32>} : memref<6x16xf32, #tpu.memory_space<vmem>>, vector<6x1xf32>,
    %50 = vector.extract_strided_slice %41 {offsets = [0, 6], sizes = [6, 3], strides = [1, 1]} : vector<6x10xf32> to vector<6x3xf32>
    %cst_33 = arith.constant dense<0xFF800000> : vector<6xf32>
    %51 = vector.multi_reduction <maximumf>, %50, %cst_33 [1] : vector<6x3xf32> to vector<6xf32>
    %52 = vector.shape_cast %51 : vector<6xf32> to vector<6x1xf32>
    %c0_34 = arith.constant 0 : index
    %c10 = arith.constant 10 : index
    %53 = vector.load %arg2[%c0_34, %c10] : memref<6x16xf32, #tpu.memory_space<vmem>>, vector<6x1xf32>
    tpu.vector_store %arg2[%c0_34, %c10], %52 {strides = array<i32>} : memref<6x16xf32, #tpu.memory_space<vmem>>, vector<6x1xf32>,
    %54 = vector.extract_strided_slice %41 {offsets = [0, 9], sizes = [6, 1], strides = [1, 1]} : vector<6x10xf32> to vector<6x1xf32>
    %cst_35 = arith.constant dense<0xFF800000> : vector<6xf32>
    %55 = vector.multi_reduction <maximumf>, %54, %cst_35 [1] : vector<6x1xf32> to vector<6xf32>
    %56 = vector.shape_cast %55 : vector<6xf32> to vector<6x1xf32>
    %cst_36 = arith.constant 0.000000e+00 : f32
    %57 = vector.broadcast %cst_36 : f32 to vector<6x1xf32>
    %58 = arith.maximumf %56, %57 : vector<6x1xf32>
    %c0_37 = arith.constant 0 : index
    %c11 = arith.constant 11 : index
    %59 = vector.load %arg2[%c0_37, %c11] : memref<6x16xf32, #tpu.memory_space<vmem>>, vector<6x1xf32>
    tpu.vector_store %arg2[%c0_37, %c11], %58 {strides = array<i32>} : memref<6x16xf32, #tpu.memory_space<vmem>>, vector<6x1xf32>,
    %c0_38 = arith.constant 0 : index
    %c12 = arith.constant 12 : index
    %c0_39 = arith.constant 0 : index
    %60 = vector.load %arg1[%c0_38, %c12, %c0_39] : memref<6x13x10xf32, #tpu.memory_space<vmem>>, vector<6x1x10xf32>
    %cst_40 = arith.constant dense<0xFF800000> : vector<6x10xf32>
    %61 = vector.multi_reduction <maximumf>, %60, %cst_40 [1] : vector<6x1x10xf32> to vector<6x10xf32>
    %62 = vector.extract_strided_slice %61 {offsets = [0, 0], sizes = [6, 3], strides = [1, 1]} : vector<6x10xf32> to vector<6x3xf32>
    %cst_41 = arith.constant dense<0xFF800000> : vector<6xf32>
    %63 = vector.multi_reduction <maximumf>, %62, %cst_41 [1] : vector<6x3xf32> to vector<6xf32>
    %64 = vector.shape_cast %63 : vector<6xf32> to vector<6x1xf32>
    %cst_42 = arith.constant 0.000000e+00 : f32
    %65 = vector.broadcast %cst_42 : f32 to vector<6x1xf32>
    %66 = arith.maximumf %64, %65 : vector<6x1xf32>
    %c0_43 = arith.constant 0 : index
    %c12_44 = arith.constant 12 : index
    %67 = vector.load %arg2[%c0_43, %c12_44] : memref<6x16xf32, #tpu.memory_space<vmem>>, vector<6x1xf32>
    tpu.vector_store %arg2[%c0_43, %c12_44], %66 {strides = array<i32>} : memref<6x16xf32, #tpu.memory_space<vmem>>, vector<6x1xf32>,
    %68 = vector.extract_strided_slice %61 {offsets = [0, 3], sizes = [6, 3], strides = [1, 1]} : vector<6x10xf32> to vector<6x3xf32>
    %cst_45 = arith.constant dense<0xFF800000> : vector<6xf32>
    %69 = vector.multi_reduction <maximumf>, %68, %cst_45 [1] : vector<6x3xf32> to vector<6xf32>
    %70 = vector.shape_cast %69 : vector<6xf32> to vector<6x1xf32>
    %cst_46 = arith.constant 0.000000e+00 : f32
    %71 = vector.broadcast %cst_46 : f32 to vector<6x1xf32>
    %72 = arith.maximumf %70, %71 : vector<6x1xf32>
    %c0_47 = arith.constant 0 : index
    %c13 = arith.constant 13 : index
    %73 = vector.load %arg2[%c0_47, %c13] : memref<6x16xf32, #tpu.memory_space<vmem>>, vector<6x1xf32>
    tpu.vector_store %arg2[%c0_47, %c13], %72 {strides = array<i32>} : memref<6x16xf32, #tpu.memory_space<vmem>>, vector<6x1xf32>,
    %74 = vector.extract_strided_slice %61 {offsets = [0, 6], sizes = [6, 3], strides = [1, 1]} : vector<6x10xf32> to vector<6x3xf32>
    %cst_48 = arith.constant dense<0xFF800000> : vector<6xf32>
    %75 = vector.multi_reduction <maximumf>, %74, %cst_48 [1] : vector<6x3xf32> to vector<6xf32>
    %76 = vector.shape_cast %75 : vector<6xf32> to vector<6x1xf32>
    %cst_49 = arith.constant 0.000000e+00 : f32
    %77 = vector.broadcast %cst_49 : f32 to vector<6x1xf32>
    %78 = arith.maximumf %76, %77 : vector<6x1xf32>
    %c0_50 = arith.constant 0 : index
    %c14 = arith.constant 14 : index
    %79 = vector.load %arg2[%c0_50, %c14] : memref<6x16xf32, #tpu.memory_space<vmem>>, vector<6x1xf32>
    tpu.vector_store %arg2[%c0_50, %c14], %78 {strides = array<i32>} : memref<6x16xf32, #tpu.memory_space<vmem>>, vector<6x1xf32>,
    %80 = vector.extract_strided_slice %61 {offsets = [0, 9], sizes = [6, 1], strides = [1, 1]} : vector<6x10xf32> to vector<6x1xf32>
    %cst_51 = arith.constant dense<0xFF800000> : vector<6xf32>
    %81 = vector.multi_reduction <maximumf>, %80, %cst_51 [1] : vector<6x1xf32> to vector<6xf32>
    %82 = vector.shape_cast %81 : vector<6xf32> to vector<6x1xf32>
    %cst_52 = arith.constant 0.000000e+00 : f32
    %83 = vector.broadcast %cst_52 : f32 to vector<6x1xf32>
    %84 = arith.maximumf %82, %83 : vector<6x1xf32>
    %c0_53 = arith.constant 0 : index
    %c15 = arith.constant 15 : index
    %85 = vector.load %arg2[%c0_53, %c15] : memref<6x16xf32, #tpu.memory_space<vmem>>, vector<6x1xf32>
    tpu.vector_store %arg2[%c0_53, %c15], %84 {strides = array<i32>} : memref<6x16xf32, #tpu.memory_space<vmem>>, vector<6x1xf32>,
    return
  }
  func.func @transform_0(%arg0: i32) -> (i32, i32, i32) {
    %c0_i32 = arith.constant 0 : i32
    %c0_i32_0 = arith.constant 0 : i32
    %c0_i32_1 = arith.constant 0 : i32
    return %arg0, %c0_i32, %c0_i32_0 : i32, i32, i32
  }
  func.func @transform_1(%arg0: i32) -> (i32, i32) {
    %c0_i32 = arith.constant 0 : i32
    %c0_i32_0 = arith.constant 0 : i32
    return %arg0, %c0_i32 : i32, i32
  }
}

</mosaic_0001>

<bundles_post_ra>
// kernel: tpu_custom_call.1
= control target key start
LH: loop header
LB: loop body
LE: loop exit
PB: predicated region body
PF: predicated region fallthrough
CT: control target
= control target key end

     0   :  { %vm15_vm0 = vcmask 76800   ;;  %vm64_vm1 = vcmask 1041409   ;;  %vm66_vm2 = vcmask 1042434   ;;  %vm68_vm3 = vcmask 1043459   ;;  %s649_s0 = inlined_call_operand.vmem [shape: f32[6,13,10], index: 0, kind: input, shape index: {}]   ;;  %s650_s1 = inlined_call_operand.hbm [shape: f32[6,16], index: 1, kind: output, shape index: {}]  }
   0x1   :  { %v9_v0 = vld [vmem:[%s649_s0] sm:$0xf]  ;;  %v10_v1 = vld [vmem:[%s649_s0 + $0x10] sm:$0xf]  ;;  %v115_v20 = vld [vmem:[%s649_s0 + $0x4] sm:$0xf] }
   0x2   :  { %v11_v2 = vld [vmem:[%s649_s0 + $0x20] sm:$0xf]  ;;  %v12_v3 = vld [vmem:[%s649_s0 + $0x30] sm:$0xf]  ;;  %v16_v6 = vsel %vm15_vm0, %v9_v0, -inf  ;;  %v23_v7 = vsel %vm15_vm0, %v10_v1, -inf }
   0x3   :  { %v13_v4 = vld [vmem:[%s649_s0 + $0x40] sm:$0xf]  ;;  %v14_v5 = vld [vmem:[%s649_s0 + $0x50] sm:$0xf]  ;;  %v30_v8 = vsel %vm15_vm0, %v11_v2, -inf  ;;  %v37_v9 = vsel %vm15_vm0, %v12_v3, -inf }
   0x4   :  { %v17_v10 = vrot.slane %v16_v6, 4  ;;  %v24_v11 = vrot.slane %v23_v7, 4  ;;  %v31_v12 = vrot.slane %v30_v8, 4  ;;  %v38_v13 = vrot.slane %v37_v9, 4  ;;  %v116_v27 = vld [vmem:[%s649_s0 + $0x14] sm:$0xf] }
   0x5   :  { %v44_v14 = vsel %vm15_vm0, %v13_v4, -inf  ;;  %v51_v15 = vsel %vm15_vm0, %v14_v5, -inf  ;;  %vm70_vm4 = vcmask 1044484   ;;  %vm72_vm5 = vcmask 1045509   ;;  %v117_v43 = vld [vmem:[%s649_s0 + $0x24] sm:$0xf] }
   0x6   :  { %v18_v16 = vmax.f32 %v16_v6, %v17_v10  ;;  %v25_v17 = vmax.f32 %v23_v7, %v24_v11  ;;  %v32_v18 = vmax.f32 %v30_v8, %v31_v12  ;;  %v39_v19 = vmax.f32 %v37_v9, %v38_v13  ;;  %v118_v46 = vld [vmem:[%s649_s0 + $0x34] sm:$0xf]  ;;  %v119_v47 = vld [vmem:[%s649_s0 + $0x44] sm:$0xf] }
   0x7   :  { %v45_v21 = vrot.slane %v44_v14, 4  ;;  %v52_v22 = vrot.slane %v51_v15, 4  ;;  %v121_v30 = vsel %vm15_vm0, %v115_v20, -inf  ;;  %vm87_vm6 = vcmask 70704  }
   0x8   :  { %v19_v23 = vrot.slane %v18_v16, 2  ;;  %v26_v24 = vrot.slane %v25_v17, 2  ;;  %v33_v25 = vrot.slane %v32_v18, 2  ;;  %v40_v26 = vrot.slane %v39_v19, 2 }
   0x9   :  { %v46_v28 = vmax.f32 %v44_v14, %v45_v21  ;;  %v53_v29 = vmax.f32 %v51_v15, %v52_v22  ;;  %vm75_vm7 = vcmask 21504   ;;  %vm81_vm8 = vcmask 46104  }
   0xa   :  { %v20_v31 = vmax.f32 %v18_v16, %v19_v23  ;;  %v27_v32 = vmax.f32 %v25_v17, %v26_v24  ;;  %v34_v33 = vmax.f32 %v32_v18, %v33_v25  ;;  %v41_v34 = vmax.f32 %v39_v19, %v40_v26 }
   0xb   :  { %v47_v35 = vrot.slane %v46_v28, 2  ;;  %v54_v36 = vrot.slane %v53_v29, 2  ;;  %v122_v37 = vrot.slane %v121_v30, 4  ;;  %v128_v38 = vsel %vm15_vm0, %v116_v27, -inf }
   0xc   :  { %v21_v39 = vrot.slane %v20_v31, 1  ;;  %v28_v40 = vrot.slane %v27_v32, 1  ;;  %v35_v41 = vrot.slane %v34_v33, 1  ;;  %v42_v42 = vrot.slane %v41_v34, 1 }
   0xd   :  { %v48_v44 = vmax.f32 %v46_v28, %v47_v35  ;;  %v55_v45 = vmax.f32 %v53_v29, %v54_v36  ;;  %v123_v48 = vmax.f32 %v121_v30, %v122_v37  ;;  %v129_v49 = vrot.slane %v128_v38, 4 }
   0xe   :  { %v22_v50 = vmax.f32 %v20_v31, %v21_v39  ;;  %v29_v51 = vmax.f32 %v27_v32, %v28_v40  ;;  %v476_v52 = vmax.f32 %v34_v33, %v35_v41  ;;  %v478_v53 = vmax.f32 %v41_v34, %v42_v42 }
   0xf   :  { %6 = vsyncpa [#allocation3], 0  ;;  %v49_v54 = vrot.slane %v48_v44, 1  ;;  %v56_v55 = vrot.slane %v55_v45, 1  ;;  %v124_v56 = vrot.slane %v123_v48, 2  ;;  %v130_v57 = vmax.f32 %v128_v38, %v129_v49  ;;  %s420_s21 = smov 122  }
  0x10   :  { %v65_v58 = vsel %vm64_vm1, %v29_v51, %v22_v50  ;;  %v120_v59 = vld [vmem:[%s649_s0 + $0x54] sm:$0xf]  ;;  %v135_v60 = vsel %vm15_vm0, %v117_v43, -inf  ;;  %v142_v61 = vsel %vm15_vm0, %v118_v46, -inf  ;;  %v149_v62 = vsel %vm15_vm0, %v119_v47, -inf  ;;  %s422_s26 = smov 2  }
  0x11   :  { %v487_v63 = vmax.f32 %v48_v44, %v49_v54  ;;  %v489_v0 = vmax.f32 %v55_v45, %v56_v55  ;;  %v67_v1 = vsel %vm66_vm2, %v476_v52, %v65_v58  ;;  %v125_v2 = vmax.f32 %v123_v48, %v124_v56  ;;  %v212_v31 = vld [vmem:[%s649_s0 + $0x8] sm:$0xf]  ;;  %v213_v32 = vld [vmem:[%s649_s0 + $0x18] sm:$0xf]  ;;  %s423_s27 = smov 6   ;;  %s424_s28 = smov [#allocation2]  }
  0x12   :  { %v69_v3 = vsel %vm68_vm3, %v478_v53, %v67_v1  ;;  %v131_v4 = vrot.slane %v130_v57, 2  ;;  %v136_v5 = vrot.slane %v135_v60, 4  ;;  %v143_v6 = vrot.slane %v142_v61, 4  ;;  %v214_v42 = vld [vmem:[%s649_s0 + $0x28] sm:$0xf]  ;;  %s383_s29 = sshll.u32 %s424_s28, 4  ;;  %s384_s29 = int_to_ptr.vmem [resolvable:$true] %s383_s29 }
  0x13   :  { %v71_v7 = vsel %vm70_vm4, %v487_v63, %v69_v3  ;;  %v126_v8 = vrot.slane %v125_v2, 1  ;;  %v150_v9 = vrot.slane %v149_v62, 4  ;;  %v156_v10 = vsel %vm15_vm0, %v120_v59, -inf  ;;  %s396_s30 = scalar_lea.vmem %s384_s29, 128  ;;  %p401_p1 = scmp.lt.s32.totalorder %s384_s29, %s384_s29 }
  0x14   :  { %v73_v11 = vsel %vm72_vm5, %v489_v0, %v71_v7  ;;  %v132_v12 = vmax.f32 %v130_v57, %v131_v4  ;;  %v137_v13 = vmax.f32 %v135_v60, %v136_v5  ;;  %v144_v14 = vmax.f32 %v142_v61, %v143_v6  ;;  %v216_v57 = vld [vmem:[%s649_s0 + $0x48] sm:$0xf]  ;;  %p397_p0 = scmp.ne.s32.totalorder %s384_s29, %s396_s30  ;;  %p402_p2 = scmp.lt.s32.totalorder %s396_s30, %s396_s30 }
  0x15   :  { %v88_v15 = vsel %vm87_vm6, %v73_v11, -inf  ;;  %v76_v16 = vsel %vm75_vm7, %v73_v11, -inf  ;;  %v82_v17 = vsel %vm81_vm8, %v73_v11, -inf  ;;  %v503_v18 = vmax.f32 %v125_v2, %v126_v8 }
  0x16   :  { %89 = vmax.xlane.f32.xlu1 %v88_v15  ;;  %77 = vmax.xlane.f32.xlu0 %v76_v16  ;;  %v133_v19 = vrot.slane %v132_v12, 1  ;;  %v138_v20 = vrot.slane %v137_v13, 2  ;;  %v145_v21 = vrot.slane %v144_v14, 2  ;;  %v151_v22 = vmax.f32 %v149_v62, %v150_v9  ;;  %v217_v62 = vld [vmem:[%s649_s0 + $0x58] sm:$0xf]  ;;  %p403_p3 = por %p402_p2, %p401_p1 }
  0x17   :  { %v157_v23 = vrot.slane %v156_v10, 4  ;;  %v93_v24 = vmax.f32 %v22_v50, 0.0  ;;  %v94_v25 = vmax.f32 %v29_v51, 0.0  ;;  %v95_v26 = vmax.f32 %v476_v52, 0.0  ;;  %v215_v51 = vld [vmem:[%s649_s0 + $0x38] sm:$0xf] }
  0x18   :  { %v506_v27 = vmax.f32 %v132_v12, %v133_v19  ;;  %v139_v28 = vmax.f32 %v137_v13, %v138_v20  ;;  %v146_v29 = vmax.f32 %v144_v14, %v145_v21  ;;  %v152_v30 = vrot.slane %v151_v22, 2  ;;  %v561_v16 = vld [vmem:[%s649_s0 + $0x1c] sm:$0x1]  ;;  %p404_p4 = pnand %p403_p3, %p397_p0 }
  0x19   :  { %v158_v33 = vmax.f32 %v156_v10, %v157_v23  ;;  %v96_v34 = vmax.f32 %v478_v53, 0.0  ;;  %v97_v35 = vmax.f32 %v487_v63, 0.0  ;;  %v105_v41 = vsel %vm64_vm1, %v94_v25, %v93_v24  ;;  %v574_v23 = vld [vmem:[%s649_s0 + $0xc] sm:$0x1] }
  0x1a   :  { %83 = vmax.xlane.f32.xlu0 %v82_v17  ;;  %v140_v36 = vrot.slane %v139_v28, 1  ;;  %v147_v37 = vrot.slane %v146_v29, 1  ;;  %v153_v38 = vmax.f32 %v151_v22, %v152_v30  ;;  %v169_v39 = vsel %vm64_vm1, %v506_v27, %v503_v18  ;;  %v566_v17 = vld [vmem:[%s649_s0 + $0x2c] sm:$0x1] }
  0x1b   :  { %v159_v40 = vrot.slane %v158_v33, 2  ;;  %v218_v43 = vsel %vm15_vm0, %v212_v31, -inf  ;;  %v225_v44 = vsel %vm15_vm0, %v213_v32, -inf  ;;  %v106_v48 = vsel %vm66_vm2, %v95_v26, %v105_v41 }
  0x1c   :  { %v525_v45 = vmax.f32 %v139_v28, %v140_v36  ;;  %v527_v46 = vmax.f32 %v146_v29, %v147_v37  ;;  %v154_v47 = vrot.slane %v153_v38, 1  ;;  %v107_v50 = vsel %vm68_vm3, %v96_v34, %v106_v48  ;;  %v579_v29 = vld [vmem:[%s649_s0 + $0x3c] sm:$0x1] }
  0x1d   :  { %v160_v49 = vmax.f32 %v158_v33, %v159_v40  ;;  %v219_v52 = vrot.slane %v218_v43, 4  ;;  %v226_v53 = vrot.slane %v225_v44, 4  ;;  %v98_v56 = vmax.f32 %v489_v0, 0.0 }
  0x1e   :  { %v534_v54 = vmax.f32 %v153_v38, %v154_v47  ;;  %v170_v55 = vsel %vm66_vm2, %v525_v45, %v169_v39  ;;  %v232_v58 = vsel %vm15_vm0, %v214_v42, -inf  ;;  %v108_v61 = vsel %vm70_vm4, %v97_v35, %v107_v50  ;;  %v586_v38 = vld [vmem:[%s649_s0 + $0x4c] sm:$0x1] }
  0x1f   :  { %v161_v59 = vrot.slane %v160_v49, 1  ;;  %v171_v60 = vsel %vm68_vm3, %v527_v46, %v170_v55  ;;  %v220_v63 = vmax.f32 %v218_v43, %v219_v52  ;;  %v227_v1 = vmax.f32 %v225_v44, %v226_v53  ;;  %v314_v52 = vld [vmem:[%s649_s0 + $0x5c] sm:$0x1]  ;;  %s421_s0 = smov 126  }
  0x20   :  { %v172_v0 = vsel %vm70_vm4, %v534_v54, %v171_v60  ;;  %v233_v2 = vrot.slane %v232_v58, 4  ;;  %v239_v3 = vsel %vm15_vm0, %v215_v51, -inf  ;;  %v246_v7 = vsel %vm15_vm0, %v216_v57, -inf }
  0x21   :  { %v552_v4 = vmax.f32 %v160_v49, %v161_v59  ;;  %v221_v5 = vrot.slane %v220_v63, 2  ;;  %v240_v6 = vrot.slane %v239_v3, 4  ;;  %v228_v8 = vrot.slane %v227_v1, 2 }
  0x22   :  { %v234_v9 = vmax.f32 %v232_v58, %v233_v2  ;;  %v247_v10 = vrot.slane %v246_v7, 4  ;;  %v253_v11 = vsel %vm15_vm0, %v217_v62, -inf  ;;  %v109_v21 = vsel %vm72_vm5, %v98_v56, %v108_v61 }
  0x23   :  { %v173_v12 = vsel %vm72_vm5, %v552_v4, %v172_v0  ;;  %v222_v13 = vmax.f32 %v220_v63, %v221_v5  ;;  %v241_v14 = vmax.f32 %v239_v3, %v240_v6  ;;  %v254_v15 = vrot.slane %v253_v11, 4 }
  0x24   :  { %v175_v19 = vsel %vm75_vm7, %v173_v12, -inf  ;;  %v180_v20 = vsel %vm81_vm8, %v173_v12, -inf  ;;  %v229_v22 = vmax.f32 %v227_v1, %v228_v8  ;;  %v235_v25 = vrot.slane %v234_v9, 2 }
  0x25   :  { %176 = vmax.xlane.f32.xlu0 %v175_v19  ;;  %v223_v24 = vrot.slane %v222_v13, 1  ;;  %v242_v26 = vrot.slane %v241_v14, 2  ;;  %v248_v28 = vmax.f32 %v246_v7, %v247_v10  ;;  %v255_v31 = vmax.f32 %v253_v11, %v254_v15 }
  0x26   :  { %v230_v30 = vrot.slane %v229_v22, 1  ;;  %v321_v32 = vrot.slane %v561_v16, 7  ;;  %v323_v33 = vrot.slane %v566_v17, 6  ;;  %v236_v35 = vmax.f32 %v234_v9, %v235_v25 }
  0x27   :  { %110 = vrot.lane.b32.xlu1 %v109_v21, %s420_s21  ;;  %v224_v34 = vmax.f32 %v222_v13, %v223_v24  ;;  %v243_v36 = vmax.f32 %v241_v14, %v242_v26  ;;  %v249_v37 = vrot.slane %v248_v28, 2  ;;  %v256_v40 = vrot.slane %v255_v31, 2 }
  0x28   :  { %v231_v39 = vmax.f32 %v229_v22, %v230_v30  ;;  %v322_v41 = vsel %vm64_vm1, %v321_v32, %v574_v23  ;;  %v325_v42 = vrot.slane %v579_v29, 5  ;;  %v237_v43 = vrot.slane %v236_v35, 1 }
  0x29   :  { %181 = vmax.xlane.f32.xlu0 %v180_v20  ;;  %v244_v44 = vrot.slane %v243_v36, 1  ;;  %v250_v47 = vmax.f32 %v248_v28, %v249_v37  ;;  %v324_v48 = vsel %vm66_vm2, %v323_v33, %v322_v41  ;;  %v185_v49 = vsel %vm87_vm6, %v173_v12, -inf }
  0x2a   :  { %v257_v50 = vmax.f32 %v255_v31, %v256_v40  ;;  %v266_v51 = vsel %vm64_vm1, %v231_v39, %v224_v34  ;;  %v327_v53 = vrot.slane %v586_v38, 4  ;;  %v238_v55 = vmax.f32 %v236_v35, %v237_v43 }
  0x2b   :  { %v245_v56 = vmax.f32 %v243_v36, %v244_v44  ;;  %v251_v57 = vrot.slane %v250_v47, 1  ;;  %v326_v58 = vsel %vm68_vm3, %v325_v42, %v324_v48  ;;  %v190_v60 = vmax.f32 %v503_v18, 0.0 }
  0x2c   :  { %v258_v59 = vrot.slane %v257_v50, 1  ;;  %v267_v62 = vsel %vm66_vm2, %v238_v55, %v266_v51  ;;  %v329_v63 = vrot.slane %v314_v52, 3  ;;  %v191_v0 = vmax.f32 %v506_v27, 0.0 }
  0x2d   :  { %186 = vmax.xlane.f32.xlu0 %v185_v49  ;;  %v252_v61 = vmax.f32 %v250_v47, %v251_v57  ;;  %v268_v2 = vsel %vm68_vm3, %v245_v56, %v267_v62  ;;  %v328_v3 = vsel %vm70_vm4, %v327_v53, %v326_v58  ;;  %v350_v6 = vmax.f32 %v574_v23, 0.0 }
  0x2e   :  { %v259_v1 = vmax.f32 %v257_v50, %v258_v59  ;;  %v192_v7 = vmax.f32 %v525_v45, 0.0  ;;  %v193_v18 = vmax.f32 %v527_v46, 0.0  ;;  %v194_v9 = vmax.f32 %v534_v54, 0.0 }
  0x2f   :  { %v269_v5 = vsel %vm70_vm4, %v252_v61, %v268_v2  ;;  %v195_v10 = vmax.f32 %v552_v4, 0.0  ;;  %v202_v27 = vsel %vm64_vm1, %v191_v0, %v190_v60  ;;  %v330_v13 = vsel %vm72_vm5, %v329_v63, %v328_v3 }
  0x30   :  { %v270_v8 = vsel %vm72_vm5, %v259_v1, %v269_v5  ;;  %v203_v14 = vsel %vm66_vm2, %v192_v7, %v202_v27  ;;  %v287_v46 = vmax.f32 %v224_v34, 0.0  ;;  %v288_v15 = vmax.f32 %v231_v39, 0.0 }
  0x31   :  { %v272_v11 = vsel %vm75_vm7, %v270_v8, -inf  ;;  %v282_v12 = vsel %vm87_vm6, %v270_v8, -inf  ;;  %v204_v45 = vsel %vm68_vm3, %v193_v18, %v203_v14  ;;  %v289_v19 = vmax.f32 %v238_v55, 0.0 }
  0x32   :  { %273 = vmax.xlane.f32.xlu0 %v272_v11  ;;  %v205_v54 = vsel %vm70_vm4, %v194_v9, %v204_v45  ;;  %v290_v20 = vmax.f32 %v245_v56, 0.0  ;;  %v291_v4 = vmax.f32 %v252_v61, 0.0  ;;  %v292_v21 = vmax.f32 %v259_v1, 0.0 }
  0x33   :  { %v206_v22 = vsel %vm72_vm5, %v195_v10, %v205_v54  ;;  %v299_v23 = vsel %vm64_vm1, %v288_v15, %v287_v46  ;;  %v351_v24 = vmax.f32 %v561_v16, 0.0  ;;  %v352_v25 = vmax.f32 %v566_v17, 0.0 }
  0x34   :  { %v300_v26 = vsel %vm66_vm2, %v289_v19, %v299_v23  ;;  %v353_v28 = vmax.f32 %v579_v29, 0.0  ;;  %v354_v30 = vmax.f32 %v586_v38, 0.0  ;;  %v355_v31 = vmax.f32 %v314_v52, 0.0 }
  0x35   :  { %v301_v32 = vsel %vm68_vm3, %v290_v20, %v300_v26  ;;  %v362_v33 = vrot.slane %v351_v24, 7  ;;  %v364_v34 = vrot.slane %v352_v25, 6  ;;  %v332_v35 = vsel %vm75_vm7, %v330_v13, -inf }
  0x36   :  { %283 = vmax.xlane.f32.xlu0 %v282_v12  ;;  %v302_v36 = vsel %vm70_vm4, %v291_v4, %v301_v32  ;;  %v366_v37 = vrot.slane %v353_v28, 5  ;;  %v368_v16 = vrot.slane %v354_v30, 4  ;;  %v370_v40 = vrot.slane %v355_v31, 3 }
  0x37   :  { %v303_v17 = vsel %vm72_vm5, %v292_v21, %v302_v36  ;;  %v363_v39 = vsel %vm64_vm1, %v362_v33, %v350_v6  ;;  %v338_v41 = vsel %vm81_vm8, %v330_v13, -inf  ;;  %v344_v44 = vsel %vm87_vm6, %v330_v13, -inf }
  0x38   :  { %v365_v29 = vsel %vm66_vm2, %v364_v34, %v363_v39  ;;  %v277_v47 = vsel %vm81_vm8, %v270_v8, -inf  ;;  %vm79_vm9 = vcmask 5120   ;;  %vm85_vm10 = vcmask 13320  }
  0x39   :  { %v367_v38 = vsel %vm68_vm3, %v366_v37, %v365_v29  ;;  %vm91_vm11 = vcmask 21520   ;;  %vm113_vm12 = vcmask 29720   ;;  %vm178_vm13 = vcmask 37920  }
  0x3a   :  { %333 = vmax.xlane.f32.xlu0 %v332_v35  ;;  %v369_v42 = vsel %vm70_vm4, %v368_v16, %v367_v38  ;;  %vm183_vm14 = vcmask 46120   ;;  %vm188_vm15 = vcmask 54320   ;;  %vm210_vm0 = vcmask 62520  }
  0x3b   :  { %v371_v43 = vsel %vm72_vm5, %v370_v40, %v369_v42  ;;  %vm275_vm1 = vcmask 70720   ;;  %vm280_vm2 = vcmask 78920   ;;  %vm285_vm3 = vcmask 87120  }
  0x3c   :  { %vm307_vm4 = vcmask 95320   ;;  %vm336_vm5 = vcmask 103520   ;;  %vm342_vm6 = vcmask 111720   ;;  %vm348_vm7 = vcmask 119920  }
  0x3d   :  { %vm375_vm8 = vcmask 128120  }
  0x3e   :  { %339 = vmax.xlane.f32.xlu0 %v338_v41 }
  0x42   :  { %345 = vmax.xlane.f32.xlu0 %v344_v44 }
  0x4b   :  { %278 = vmax.xlane.f32.xlu1 %v277_v47 }
  0x58   :  { %207 = vrot.lane.b32.xlu0 %v206_v22, %s421_s0 }
  0x5c   :  { %304 = vrot.lane.b32.xlu1 %v303_v17, %s422_s26  ;;  %372 = vrot.lane.b32.xlu0 %v371_v43, %s423_s27 }
  0xa3   :  { %v90_v48 = vpop.xlane.xlu1 %89  ;;  %v78_v49 = vpop.xlane.xlu0 %77 }
  0xa4   :  { %80 = vst.msk [vmem:[#allocation2] sm:$0x3f] %vm79_vm9, %v78_v49 }
  0xa7   :  { %v84_v50 = vpop.xlane.xlu0 %83  ;;  %v111_v51 = vpop.permute.xlu1 %110 }
  0xa8   :  { %86 = vst.msk [vmem:[#allocation2] sm:$0x3f] %vm85_vm10, %v84_v50 }
  0xa9   :  { %92 = vst.msk [vmem:[#allocation2] sm:$0x3f] %vm91_vm11, %v90_v48 }
  0xaa   :  { %114 = vst.msk [vmem:[#allocation2] sm:$0x3f] %vm113_vm12, %v111_v51 }
  0xb2   :  { %v177_v52 = vpop.xlane.xlu0 %176 }
  0xb3   :  { %179 = vst.msk [vmem:[#allocation2] sm:$0x3f] %vm178_vm13, %v177_v52 }
  0xb6   :  { %v182_v53 = vpop.xlane.xlu0 %181 }
  0xb7   :  { %184 = vst.msk [vmem:[#allocation2] sm:$0x3f] %vm183_vm14, %v182_v53 }
  0xba   :  { %v187_v55 = vpop.xlane.xlu0 %186 }
  0xbb   :  { %189 = vst.msk [vmem:[#allocation2] sm:$0x3f] %vm188_vm15, %v187_v55 }
  0xbf   :  { %v274_v56 = vpop.xlane.xlu0 %273 }
  0xc3   :  { %v284_v57 = vpop.xlane.xlu0 %283 }
  0xc7   :  { %v334_v58 = vpop.xlane.xlu0 %333 }
  0xc8   :  { %v335_v63 = vmax.f32 %v334_v58, 0.0 }
  0xcb   :  { %v340_v59 = vpop.xlane.xlu0 %339 }
  0xcc   :  { %v341_v1 = vmax.f32 %v340_v59, 0.0 }
  0xcf   :  { %v346_v60 = vpop.xlane.xlu0 %345 }
  0xd0   :  { %v347_v2 = vmax.f32 %v346_v60, 0.0 }
  0xd3   :  { %v208_v61 = vpop.permute.xlu0 %207 }
  0xd4   :  { %211 = vst.msk [vmem:[#allocation2] sm:$0x3f] %vm210_vm0, %v208_v61 }
  0xd5   :  { %276 = vst.msk [vmem:[#allocation2] sm:$0x3f] %vm275_vm1, %v274_v56 }
  0xd7   :  { %v373_v3 = vpop.permute.xlu0 %372 }
  0xd8   :  { %v279_v62 = vpop.xlane.xlu1 %278 }
  0xd9   :  { %281 = vst.msk [vmem:[#allocation2] sm:$0x3f] %vm280_vm2, %v279_v62 }
  0xda   :  { %286 = vst.msk [vmem:[#allocation2] sm:$0x3f] %vm285_vm3, %v284_v57 }
  0xdc   :  { %v305_v0 = vpop.permute.xlu1 %304 }
  0xdd   :  { %308 = vst.msk [vmem:[#allocation2] sm:$0x3f] %vm307_vm4, %v305_v0 }
  0xde   :  { %337 = vst.msk [vmem:[#allocation2] sm:$0x3f] %vm336_vm5, %v335_v63 }
  0xdf   :  { %343 = vst.msk [vmem:[#allocation2] sm:$0x3f] %vm342_vm6, %v341_v1 }
  0xe0   :  { %349 = vst.msk [vmem:[#allocation2] sm:$0x3f] %vm348_vm7, %v347_v2 }
  0xe1   :  { %376 = vst.msk [vmem:[#allocation2] sm:$0x3f] %vm375_vm8, %v373_v3 }
  0xe2   :  { %407 = shalt.err (!%p404_p4)
}
  0xe3   :  { %s408_s4 = scalar_lea.hbm %s650_s1, 128 }
  0xe4   :  { %p409_p5 = scmp.ne.s32.totalorder %s650_s1, %s408_s4  ;;  %p412_p6 = scmp.lt.u32.totalorder %s408_s4, %s650_s1 }
  0xe6   :  { %p414_p7 = pnand %p412_p6, %p409_p5 }
  0xe8   :  { %417 = shalt.err (!%p414_p7)
}
  0xe9   :  { %386 = dma.vmem_to_hbm [thread:$0]  %s384_s29, 128, %s650_s1, [#allocation3]  }
  0xea   :  { %418 = dma.done.wait [#allocation3], 128  }
  0xeb   :  { %419 = vsyncadd [#allocation3], 4294967168 }
  0xec   :  { %390 = vsyncpa [#allocation3], 1 }

</bundles_post_ra>
